<compile_context>
chip_gen: v6e
topology: v6e:2x2x1
jax: 0.10.0
libtpu: 0.0.40
codegen_flags: <defaults>
</compile_context>

<pallas_src>
import jax
import jax.numpy as jnp
from jax.experimental import pallas as pl
from jax.experimental.pallas import tpu as pltpu


def _round_up(n, m):
    return ((n + m - 1) // m) * m


# Contract the last dim of lhs with the last dim of rhs (A @ B^T), the same
# dimension numbers the reference flash-attention kernel uses for q @ k^T.
_NT_DIMS = (((1,), (1,)), ((), ()))


def critic_kernel(x_ref,
                  w1t_ref, b1_ref,
                  w2t_ref, b2_ref,
                  w3t_ref, b3_ref,
                  w4_ref, b4_ref,
                  o_ref):
    # Feature-major: batch stays on the 128-lane axis throughout, so every
    # intermediate and the output row are lane-dense.
    # ---- Layer 1: (64, in) x (tb, in)^T -> (64, tb).  f32 (x arrives f32;
    # K = in_dim is tiny, so MXU cost is negligible), f32 accumulate.
    h = jax.lax.dot_general(w1t_ref[...], x_ref[...], _NT_DIMS,
                            preferred_element_type=jnp.float32)
    h = jnp.maximum(h + b1_ref[...], 0.0)
    # ---- Layer 2: (128, 64) x (64, tb) -> (128, tb).  In-kernel cast to the
    # MXU compute dtype (hides under the matmul; no extra HBM pass).
    h = jnp.dot(w2t_ref[...], h.astype(w2t_ref.dtype),
                preferred_element_type=jnp.float32)
    h = jnp.maximum(h + b2_ref[...], 0.0)
    # ---- Layer 3: (32, 128) x (128, tb) -> (32, tb).
    h = jnp.dot(w3t_ref[...], h.astype(w3t_ref.dtype),
                preferred_element_type=jnp.float32)
    h = jnp.maximum(h + b3_ref[...], 0.0)
    # ---- Layer 4 (32 -> 1): VPU broadcast-multiply + XLU sublane reduce
    # instead of a 1-row MXU matmul.  Result is a lane-dense (1, tb) row.
    out = jnp.sum(h * w4_ref[...], axis=0, keepdims=True) + b4_ref[...]
    o_ref[...] = out.astype(o_ref.dtype)


def init_critic_params(key, nb_states, nb_actions, hidden_layer_list=(64, 128, 32)):
    dims = [nb_states + nb_actions] + list(hidden_layer_list) + [1]
    params = []
    for i in range(len(dims) - 1):
        key, sub = jax.random.split(key)
        fan_in, fan_out = dims[i], dims[i + 1]
        # Matches PyTorch initialize_weights: v = 1/sqrt(weight.size()[0]) with
        # weight of shape (out_features, in_features) -> 1/sqrt(out_features).
        v = 1.0 / float(fan_out) ** 0.5
        w = jax.random.uniform(sub, (fan_in, fan_out), jnp.float32, minval=-v, maxval=v)
        b = jnp.zeros((1, fan_out), jnp.float32)
        params.append((w, b))
    return params


def prepare_critic_params(params, compute_dtype=jnp.bfloat16):
    """One-time weight prep for the kernel layout (hoist out of the hot path):
    transposed weights (out_features, in_features), column biases, and the
    32->1 layer as a (32, 1) column for the VPU/XLU epilogue."""
    (w1, b1), (w2, b2), (w3, b3), (w4, b4) = params
    w1t = w1.T.astype(jnp.float32)            # layer 1 runs in f32
    w2t = w2.T.astype(compute_dtype)          # (128, 64)
    w3t = w3.T.astype(compute_dtype)          # (32, 128)
    w4c = w4.reshape(-1, 1).astype(jnp.float32)   # (32, 1)
    b1c = b1.reshape(-1, 1).astype(jnp.float32)   # (64, 1)
    b2c = b2.reshape(-1, 1).astype(jnp.float32)   # (128, 1)
    b3c = b3.reshape(-1, 1).astype(jnp.float32)   # (32, 1)
    b4c = b4.reshape(1, 1).astype(jnp.float32)    # (1, 1)
    return (w1t, b1c, w2t, b2c, w3t, b3c, w4c, b4c)


def _choose_tile(batch, tile_b):
    """Batch tile.  Small batches -> one full-dim block; larger batches ->
    multiple-of-128 blocks with >= 2 grid steps so the "parallel" batch axis
    can be sharded across v7x's two TensorCores."""
    if batch <= 256:
        return batch
    tb = min(int(tile_b), _round_up(pl.cdiv(batch, 2), 128))
    return max(128, (tb // 128) * 128)


def critic_apply(x, prepped, *, tile_b=2048):
    """Forward pass with pre-prepared params (see prepare_critic_params)."""
    w1t, b1, w2t, b2, w3t, b3, w4c, b4 = prepped
    if x.dtype != jnp.float32:
        x = x.astype(jnp.float32)
    batch, in_dim = x.shape

    tb = _choose_tile(batch, tile_b)
    grid = (pl.cdiv(batch, tb),)   # partial tail block; no jnp.pad copy of x

    def resident(arr):
        # Same block every grid step -> DMA'd once, stays VMEM-resident.
        return pl.BlockSpec(arr.shape, lambda i: (0, 0))

    out_row = pl.pallas_call(
        critic_kernel,
        out_shape=jax.ShapeDtypeStruct((1, batch), jnp.float32),
        grid=grid,
        in_specs=[
            pl.BlockSpec((tb, in_dim), lambda i: (i, 0)),   # x tile (pipelined)
            resident(w1t), resident(b1),
            resident(w2t), resident(b2),
            resident(w3t), resident(b3),
            resident(w4c), resident(b4),
        ],
        # Lane-dense output: (1, tb) row per step, written to a (1, batch) slab.
        out_specs=pl.BlockSpec((1, tb), lambda i: (0, i)),
        compiler_params=pltpu.CompilerParams(
            dimension_semantics=("parallel",),   # megacore sharding on v7x
        ),
    )(x, w1t, b1, w2t, b2, w3t, b3, w4c, b4)

    # (1, batch) -> (batch, 1): same linear layout, free reshape.
    return out_row.reshape(batch, 1)


def critic_forward(x, params, *, compute_dtype=jnp.bfloat16, tile_b=2048):
    """Convenience wrapper: prep + apply.  Use prepare_critic_params +
    critic_apply directly (or jit this whole function) to hoist the weight
    prep off the hot path.  compute_dtype=jnp.float32 is the exact path."""
    prepped = prepare_critic_params(params, compute_dtype)
    return critic_apply(x, prepped, tile_b=tile_b)


def critic_ref(x, params):
    h = x
    for i, (w, b) in enumerate(params):
        h = h @ w + b
        if i < len(params) - 1:
            h = jnp.maximum(h, 0.0)
    return h


if __name__ == "__main__":
    key = jax.random.PRNGKey(0)
    nb_states, nb_actions = 12, 4
    in_dim = nb_states + nb_actions
    pkey, k1, k2, k3 = jax.random.split(key, 4)

    params = init_critic_params(pkey, nb_states, nb_actions,
                                hidden_layer_list=(64, 128, 32))

    x_small = jax.random.normal(k1, (8, in_dim), jnp.float32)      # single block
    x_mid = jax.random.normal(k2, (300, in_dim), jnp.float32)      # grid + tail
    x_big = jax.random.normal(k3, (1024, in_dim), jnp.float32)     # 2-step default grid

    ref_small = critic_ref(x_small, params)
    ref_mid = critic_ref(x_mid, params)
    ref_big = critic_ref(x_big, params)

    # 1) Exact-semantics check: f32 path vs pure-f32 reference (single step).
    out_f32 = jax.block_until_ready(
        critic_forward(x_small, params, compute_dtype=jnp.float32))
    assert out_f32.shape == (8, 1)
    assert jnp.allclose(out_f32, ref_small, atol=2e-5, rtol=2e-5), "f32 mismatch"

    # 2) bf16 fast path (default): loose tolerance vs f32 reference.
    out_bf16 = jax.block_until_ready(critic_forward(x_small, params))
    assert out_bf16.shape == (8, 1)
    assert jnp.allclose(out_bf16, ref_small, atol=5e-2, rtol=5e-2), "bf16 mismatch"

    # 3) Multi-step grid + partial tail block (300 -> 3 x 128), f32, with the
    #    weight prep hoisted out of the call.
    prepped_f32 = prepare_critic_params(params, jnp.float32)
    out_mid = jax.block_until_ready(critic_apply(x_mid, prepped_f32, tile_b=128))
    assert out_mid.shape == (300, 1)
    assert jnp.allclose(out_mid, ref_mid, atol=2e-5, rtol=2e-5), "grid/tail mismatch"

    # 4) Default tiling (1024 -> 2 x 512, megacore-splittable), bf16 path.
    out_big = jax.block_until_ready(critic_forward(x_big, params))
    assert out_big.shape == (1024, 1)
    assert jnp.allclose(out_big, ref_big, atol=5e-2, rtol=5e-2), "big-batch mismatch"

    print("KERNEL_OK")
</pallas_src>

<mosaic_0001>
module attributes {stable_mosaic.version = 11 : i64} {
  func.func @critic_kernel(%arg0: i32, %arg1: memref<8x16xf32, #tpu.memory_space<vmem>>, %arg2: memref<64x16xf32, #tpu.memory_space<vmem>>, %arg3: memref<64x1xf32, #tpu.memory_space<vmem>>, %arg4: memref<128x64xf32, #tpu.memory_space<vmem>>, %arg5: memref<128x1xf32, #tpu.memory_space<vmem>>, %arg6: memref<32x128xf32, #tpu.memory_space<vmem>>, %arg7: memref<32x1xf32, #tpu.memory_space<vmem>>, %arg8: memref<32x1xf32, #tpu.memory_space<vmem>>, %arg9: memref<1x1xf32, #tpu.memory_space<vmem>>, %arg10: memref<1x8xf32, #tpu.memory_space<vmem>>) attributes {dimension_semantics = [#tpu.dimension_semantics<parallel>], iteration_bounds = array<i64: 1>, scalar_prefetch = 0 : i64, scratch_operands = 0 : i64, tpu.core_type = #tpu.core_type<tc>, window_params = [{transform_indices = @transform_0, window_bounds = array<i64: 8, 16>}, {pipeline_mode = #tpu.pipeline_mode<synchronous>, transform_indices = @transform_1, window_bounds = array<i64: 64, 16>}, {pipeline_mode = #tpu.pipeline_mode<synchronous>, transform_indices = @transform_2, window_bounds = array<i64: 64, 1>}, {pipeline_mode = #tpu.pipeline_mode<synchronous>, transform_indices = @transform_3, window_bounds = array<i64: 128, 64>}, {pipeline_mode = #tpu.pipeline_mode<synchronous>, transform_indices = @transform_4, window_bounds = array<i64: 128, 1>}, {pipeline_mode = #tpu.pipeline_mode<synchronous>, transform_indices = @transform_5, window_bounds = array<i64: 32, 128>}, {pipeline_mode = #tpu.pipeline_mode<synchronous>, transform_indices = @transform_6, window_bounds = array<i64: 32, 1>}, {pipeline_mode = #tpu.pipeline_mode<synchronous>, transform_indices = @transform_7, window_bounds = array<i64: 32, 1>}, {pipeline_mode = #tpu.pipeline_mode<synchronous>, transform_indices = @transform_8, window_bounds = array<i64: 1, 1>}, {transform_indices = @transform_9, window_bounds = array<i64: 1, 8>}]} {
    %c0 = arith.constant 0 : index
    %c0_0 = arith.constant 0 : index
    %0 = vector.load %arg2[%c0, %c0_0] : memref<64x16xf32, #tpu.memory_space<vmem>>, vector<64x16xf32>
    %c0_1 = arith.constant 0 : index
    %c0_2 = arith.constant 0 : index
    %1 = vector.load %arg1[%c0_1, %c0_2] : memref<8x16xf32, #tpu.memory_space<vmem>>, vector<8x16xf32>
    %cst = arith.constant dense<0.000000e+00> : vector<64x8xf32>
    %2 = tpu.matmul %0, %1, %cst {dimension_numbers = #tpu.dot_dimension_numbers<[1], [1], [0], [0], [0, 0, 1, 0], [], []>} : vector<64x16xf32>, vector<8x16xf32>, vector<64x8xf32> -> vector<64x8xf32>
    %c0_3 = arith.constant 0 : index
    %c0_4 = arith.constant 0 : index
    %3 = vector.load %arg3[%c0_3, %c0_4] : memref<64x1xf32, #tpu.memory_space<vmem>>, vector<64x1xf32>
    %4 = vector.broadcast %3 : vector<64x1xf32> to vector<64x8xf32>
    %5 = arith.addf %2, %4 : vector<64x8xf32>
    %cst_5 = arith.constant 0.000000e+00 : f32
    %6 = vector.broadcast %cst_5 : f32 to vector<64x8xf32>
    %7 = arith.maximumf %5, %6 : vector<64x8xf32>
    %c0_6 = arith.constant 0 : index
    %c0_7 = arith.constant 0 : index
    %8 = vector.load %arg4[%c0_6, %c0_7] : memref<128x64xf32, #tpu.memory_space<vmem>>, vector<128x64xf32>
    %cst_8 = arith.constant dense<0.000000e+00> : vector<128x8xf32>
    %9 = tpu.matmul %8, %7, %cst_8 {dimension_numbers = #tpu.dot_dimension_numbers<[1], [0], [0], [1], [0, 0, 1, 1], [], []>} : vector<128x64xf32>, vector<64x8xf32>, vector<128x8xf32> -> vector<128x8xf32>
    %c0_9 = arith.constant 0 : index
    %c0_10 = arith.constant 0 : index
    %10 = vector.load %arg5[%c0_9, %c0_10] : memref<128x1xf32, #tpu.memory_space<vmem>>, vector<128x1xf32>
    %11 = vector.broadcast %10 : vector<128x1xf32> to vector<128x8xf32>
    %12 = arith.addf %9, %11 : vector<128x8xf32>
    %cst_11 = arith.constant 0.000000e+00 : f32
    %13 = vector.broadcast %cst_11 : f32 to vector<128x8xf32>
    %14 = arith.maximumf %12, %13 : vector<128x8xf32>
    %c0_12 = arith.constant 0 : index
    %c0_13 = arith.constant 0 : index
    %15 = vector.load %arg6[%c0_12, %c0_13] : memref<32x128xf32, #tpu.memory_space<vmem>>, vector<32x128xf32>
    %cst_14 = arith.constant dense<0.000000e+00> : vector<32x8xf32>
    %16 = tpu.matmul %15, %14, %cst_14 {dimension_numbers = #tpu.dot_dimension_numbers<[1], [0], [0], [1], [0, 0, 1, 1], [], []>} : vector<32x128xf32>, vector<128x8xf32>, vector<32x8xf32> -> vector<32x8xf32>
    %c0_15 = arith.constant 0 : index
    %c0_16 = arith.constant 0 : index
    %17 = vector.load %arg7[%c0_15, %c0_16] : memref<32x1xf32, #tpu.memory_space<vmem>>, vector<32x1xf32>
    %18 = vector.broadcast %17 : vector<32x1xf32> to vector<32x8xf32>
    %19 = arith.addf %16, %18 : vector<32x8xf32>
    %cst_17 = arith.constant 0.000000e+00 : f32
    %20 = vector.broadcast %cst_17 : f32 to vector<32x8xf32>
    %21 = arith.maximumf %19, %20 : vector<32x8xf32>
    %c0_18 = arith.constant 0 : index
    %c0_19 = arith.constant 0 : index
    %22 = vector.load %arg8[%c0_18, %c0_19] : memref<32x1xf32, #tpu.memory_space<vmem>>, vector<32x1xf32>
    %23 = vector.broadcast %22 : vector<32x1xf32> to vector<32x8xf32>
    %24 = arith.mulf %21, %23 : vector<32x8xf32>
    %cst_20 = arith.constant dense<0.000000e+00> : vector<8xf32>
    %25 = vector.multi_reduction <add>, %24, %cst_20 [0] : vector<32x8xf32> to vector<8xf32>
    %26 = vector.shape_cast %25 : vector<8xf32> to vector<1x8xf32>
    %c0_21 = arith.constant 0 : index
    %c0_22 = arith.constant 0 : index
    %27 = vector.load %arg9[%c0_21, %c0_22] : memref<1x1xf32, #tpu.memory_space<vmem>>, vector<1x1xf32>
    %28 = vector.broadcast %27 : vector<1x1xf32> to vector<1x8xf32>
    %29 = arith.addf %26, %28 : vector<1x8xf32>
    %c0_23 = arith.constant 0 : index
    %c0_24 = arith.constant 0 : index
    %30 = vector.load %arg10[%c0_23, %c0_24] : memref<1x8xf32, #tpu.memory_space<vmem>>, vector<1x8xf32>
    tpu.vector_store %arg10[%c0_23, %c0_24], %29 {strides = array<i32>} : memref<1x8xf32, #tpu.memory_space<vmem>>, vector<1x8xf32>,
    return
  }
  func.func @transform_0(%arg0: i32) -> (i32, i32) {
    %c0_i32 = arith.constant 0 : i32
    %c0_i32_0 = arith.constant 0 : i32
    return %arg0, %c0_i32 : i32, i32
  }
  func.func @transform_1(%arg0: i32) -> (i32, i32) {
    %c0_i32 = arith.constant 0 : i32
    %c0_i32_0 = arith.constant 0 : i32
    %c0_i32_1 = arith.constant 0 : i32
    return %c0_i32, %c0_i32_0 : i32, i32
  }
  func.func @transform_2(%arg0: i32) -> (i32, i32) {
    %c0_i32 = arith.constant 0 : i32
    %c0_i32_0 = arith.constant 0 : i32
    %c0_i32_1 = arith.constant 0 : i32
    return %c0_i32, %c0_i32_0 : i32, i32
  }
  func.func @transform_3(%arg0: i32) -> (i32, i32) {
    %c0_i32 = arith.constant 0 : i32
    %c0_i32_0 = arith.constant 0 : i32
    %c0_i32_1 = arith.constant 0 : i32
    return %c0_i32, %c0_i32_0 : i32, i32
  }
  func.func @transform_4(%arg0: i32) -> (i32, i32) {
    %c0_i32 = arith.constant 0 : i32
    %c0_i32_0 = arith.constant 0 : i32
    %c0_i32_1 = arith.constant 0 : i32
    return %c0_i32, %c0_i32_0 : i32, i32
  }
  func.func @transform_5(%arg0: i32) -> (i32, i32) {
    %c0_i32 = arith.constant 0 : i32
    %c0_i32_0 = arith.constant 0 : i32
    %c0_i32_1 = arith.constant 0 : i32
    return %c0_i32, %c0_i32_0 : i32, i32
  }
  func.func @transform_6(%arg0: i32) -> (i32, i32) {
    %c0_i32 = arith.constant 0 : i32
    %c0_i32_0 = arith.constant 0 : i32
    %c0_i32_1 = arith.constant 0 : i32
    return %c0_i32, %c0_i32_0 : i32, i32
  }
  func.func @transform_7(%arg0: i32) -> (i32, i32) {
    %c0_i32 = arith.constant 0 : i32
    %c0_i32_0 = arith.constant 0 : i32
    %c0_i32_1 = arith.constant 0 : i32
    return %c0_i32, %c0_i32_0 : i32, i32
  }
  func.func @transform_8(%arg0: i32) -> (i32, i32) {
    %c0_i32 = arith.constant 0 : i32
    %c0_i32_0 = arith.constant 0 : i32
    %c0_i32_1 = arith.constant 0 : i32
    return %c0_i32, %c0_i32_0 : i32, i32
  }
  func.func @transform_9(%arg0: i32) -> (i32, i32) {
    %c0_i32 = arith.constant 0 : i32
    %c0_i32_0 = arith.constant 0 : i32
    return %c0_i32, %arg0 : i32, i32
  }
}

</mosaic_0001>

<bundles_post_ra>
// kernel: tpu_custom_call.1
= control target key start
LH: loop header
LB: loop body
LE: loop exit
PB: predicated region body
PF: predicated region fallthrough
CT: control target
= control target key end

     0   :  { %s1216_s0 = inlined_call_operand.vmem [shape: f32[8,16], index: 0, kind: input, shape index: {}]   ;;  %s1217_s1 = inlined_call_operand.vmem [shape: f32[64,16], index: 1, kind: input, shape index: {}]   ;;  %s1218_s2 = inlined_call_operand.vmem [shape: f32[64,1], index: 2, kind: input, shape index: {}]   ;;  %s1219_s3 = inlined_call_operand.vmem [shape: f32[128,64], index: 3, kind: input, shape index: {}]   ;;  %s1220_s4 = inlined_call_operand.vmem [shape: f32[128,1], index: 4, kind: input, shape index: {}]   ;;  %s1221_s5 = inlined_call_operand.vmem [shape: f32[32,128], index: 5, kind: input, shape index: {}]   ;;  %s1222_s6 = inlined_call_operand.vmem [shape: f32[32,1], index: 6, kind: input, shape index: {}]   ;;  %s1223_s7 = inlined_call_operand.vmem [shape: f32[32,1], index: 7, kind: input, shape index: {}]   ;;  %s1224_s8 = inlined_call_operand.<no memory space> [shape: f32[1,1], index: 8, kind: input, shape index: {}]   ;;  %s1225_s9 = inlined_call_operand.hbm [shape: f32[1,8], index: 9, kind: output, shape index: {}]  }
   0x1   :  { %v14_v0 = vstv %s1224_s8 }
   0x2   :  { %15 = vst [vmem:[#allocation2] sm:$0x1] %v14_v0 }
   0x3   :  { %v43_v1 = vld [vmem:[%s1216_s0] sm:$0xff]  ;;  %vm92_vm0 = vcmask 130048   ;;  %v36_v3 = vld [vmem:[%s1217_s1 + $0x8] sm:$0xff]  ;;  %v937_v4 = vmov 0   ;;  %v37_v5 = vld [vmem:[%s1217_s1 + $0x10] sm:$0xff] }
   0x4   :  { %v35_v2 = vld [vmem:[%s1217_s1] sm:$0xff]  ;;  %819 = vmatprep.subr.msk.mxu0 %vm92_vm0, %v43_v1  ;;  %913 = vset.pattern.permute.xlu0 %v937_v4  ;;  %v51_v6 = vld [vmem:[%s1218_s2 + $0x38] sm:$0xff]  ;;  %v49_v7 = vld [vmem:[%s1218_s2 + $0x28] sm:$0xff] }
   0x5   :  { %821 = vmatprep.mubr.msk.f32.mxu0 %vm92_vm0, %v35_v2  ;;  %820 = vmatpush3.xpose.msk.msra.mxu0 %vm92_vm0, %v43_v1  ;;  %v50_v8 = vld [vmem:[%s1218_s2 + $0x30] sm:$0xff]  ;;  %v48_v9 = vld [vmem:[%s1218_s2 + $0x20] sm:$0xff]  ;;  %v38_v10 = vld [vmem:[%s1217_s1 + $0x18] sm:$0xff] }
   0x6   :  { %914 = vset.pattern.permute.xlu1 %v937_v4  ;;  %89 = vperm.xlu0 %913, %v51_v6   ;;  %v39_v11 = vld [vmem:[%s1217_s1 + $0x20] sm:$0xff]  ;;  %v47_v12 = vld [vmem:[%s1218_s2 + $0x18] sm:$0xff]  ;;  %v46_v13 = vld [vmem:[%s1218_s2 + $0x10] sm:$0xff] }
   0x7   :  { %79 = vperm.xlu1 %914, %v49_v7   ;;  %v40_v14 = vld [vmem:[%s1217_s1 + $0x28] sm:$0xff]  ;;  %v41_v15 = vld [vmem:[%s1217_s1 + $0x30] sm:$0xff]  ;;  %v44_v17 = vld [vmem:[%s1218_s2] sm:$0xff] }
   0x8   :  { %822 = vmatmul.mubr.msk.f32.vlgmr.msra.gmra.mxu0 %vm92_vm0, %v36_v3  ;;  %v45_v16 = vld [vmem:[%s1218_s2 + $0x8] sm:$0xff]  ;;  %v42_v18 = vld [vmem:[%s1217_s1 + $0x38] sm:$0xff] }
   0x9   :  { %824 = vmatprep.mubr.msk.f32.mxu0 %vm92_vm0, %v37_v5 }
   0xa   :  { %84 = vperm.xlu0 %913, %v50_v8  }
   0xb   :  { %74 = vperm.xlu1 %914, %v48_v9  }
   0xc   :  { %825 = vmatmul.mubr.msk.f32.gmra.mxu0 %vm92_vm0, %v38_v10 }
   0xd   :  { %827 = vmatprep.mubr.msk.f32.mxu0 %vm92_vm0, %v39_v11 }
   0xe   :  { %69 = vperm.xlu0 %913, %v47_v12  }
   0xf   :  { %64 = vperm.xlu1 %914, %v46_v13  }
  0x10   :  { %828 = vmatmul.mubr.msk.f32.gmra.mxu0 %vm92_vm0, %v40_v14 }
  0x11   :  { %830 = vmatprep.mubr.msk.f32.mxu0 %vm92_vm0, %v41_v15 }
  0x12   :  { %16 = vsyncpa [#allocation4], 0  ;;  %59 = vperm.xlu0 %913, %v45_v16   ;;  %v264_v19 = vld [vmem:[%s1220_s4 + $0x78] sm:$0xff]  ;;  %v263_v20 = vld [vmem:[%s1220_s4 + $0x70] sm:$0xff]  ;;  %vm345_vm1 = vcmask 523264   ;;  %vm700_vm2 = vcmask 64512  }
  0x13   :  { %54 = vperm.xlu1 %914, %v44_v17   ;;  %v262_v21 = vld [vmem:[%s1220_s4 + $0x68] sm:$0xff]  ;;  %v261_v22 = vld [vmem:[%s1220_s4 + $0x60] sm:$0xff]  ;;  %v260_v23 = vld [vmem:[%s1220_s4 + $0x58] sm:$0xff]  ;;  %vm725_vm3 = vcmask 57344  }
  0x14   :  { %831 = vmatmul.mubr.msk.f32.gmra.mxu0 %vm92_vm0, %v42_v18  ;;  %v259_v24 = vld [vmem:[%s1220_s4 + $0x50] sm:$0xff]  ;;  %v258_v25 = vld [vmem:[%s1220_s4 + $0x48] sm:$0xff]  ;;  %v257_v26 = vld [vmem:[%s1220_s4 + $0x40] sm:$0xff] }
  0x15   :  { %v256_v27 = vld [vmem:[%s1220_s4 + $0x38] sm:$0xff]  ;;  %v255_v28 = vld [vmem:[%s1220_s4 + $0x30] sm:$0xff]  ;;  %v254_v29 = vld [vmem:[%s1220_s4 + $0x28] sm:$0xff] }
  0x16   :  { %342 = vperm.xlu0 %913, %v264_v19   ;;  %v253_v30 = vld [vmem:[%s1220_s4 + $0x20] sm:$0xff]  ;;  %v252_v31 = vld [vmem:[%s1220_s4 + $0x18] sm:$0xff]  ;;  %v251_v32 = vld [vmem:[%s1220_s4 + $0x10] sm:$0xff] }
  0x17   :  { %337 = vperm.xlu1 %914, %v263_v20   ;;  %v250_v33 = vld [vmem:[%s1220_s4 + $0x8] sm:$0xff]  ;;  %v249_v34 = vld [vmem:[%s1220_s4] sm:$0xff]  ;;  %v561_v37 = vld [vmem:[%s1222_s6 + $0x10] sm:$0xff] }
  0x18   :  { %v559_v35 = vld [vmem:[%s1222_s6] sm:$0xff]  ;;  %v560_v36 = vld [vmem:[%s1222_s6 + $0x8] sm:$0xff]  ;;  %v562_v38 = vld [vmem:[%s1222_s6 + $0x18] sm:$0xff] }
  0x19   :  { %v672_v39 = vld [vmem:[%s1223_s7] sm:$0xff]  ;;  %v673_v40 = vld [vmem:[%s1223_s7 + $0x8] sm:$0xff]  ;;  %v674_v41 = vld [vmem:[%s1223_s7 + $0x10] sm:$0xff] }
  0x1a   :  { %332 = vperm.xlu0 %913, %v262_v21   ;;  %v675_v42 = vld [vmem:[%s1223_s7 + $0x18] sm:$0xff]  ;;  %v714_v43 = vld [vmem:[#allocation2] sm:$0x1]  ;;  %v234_v13 = vld [vmem:[%s1219_s3 + $0x8] sm:$0xff] }
  0x1b   :  { %327 = vperm.xlu1 %914, %v261_v22   ;;  %v233_v44 = vld [vmem:[%s1219_s3] sm:$0xff]  ;;  %v235_v14 = vld [vmem:[%s1219_s3 + $0x10] sm:$0xff]  ;;  %v236_v15 = vld [vmem:[%s1219_s3 + $0x18] sm:$0xff] }
  0x1c   :  { %849 = vmatprep.mubr.msk.f32.mxu1 %vm345_vm1, %v233_v44  ;;  %v237_v16 = vld [vmem:[%s1219_s3 + $0x20] sm:$0xff]  ;;  %v238_v17 = vld [vmem:[%s1219_s3 + $0x28] sm:$0xff]  ;;  %v239_v18 = vld [vmem:[%s1219_s3 + $0x30] sm:$0xff] }
  0x1d   :  { %v240_v19 = vld [vmem:[%s1219_s3 + $0x38] sm:$0xff]  ;;  %v241_v20 = vld [vmem:[%s1219_s3 + $0x40] sm:$0xff]  ;;  %v242_v21 = vld [vmem:[%s1219_s3 + $0x48] sm:$0xff] }
  0x1e   :  { %322 = vperm.xlu0 %913, %v260_v23   ;;  %v243_v22 = vld [vmem:[%s1219_s3 + $0x50] sm:$0xff]  ;;  %v244_v23 = vld [vmem:[%s1219_s3 + $0x58] sm:$0xff] }
  0x1f   :  { %317 = vperm.xlu1 %914, %v259_v24   ;;  %v245_v24 = vld [vmem:[%s1219_s3 + $0x60] sm:$0xff] }
  0x22   :  { %312 = vperm.xlu0 %913, %v258_v25   ;;  %v246_v25 = vld [vmem:[%s1219_s3 + $0x68] sm:$0xff] }
  0x23   :  { %307 = vperm.xlu1 %914, %v257_v26   ;;  %v247_v26 = vld [vmem:[%s1219_s3 + $0x70] sm:$0xff] }
  0x26   :  { %302 = vperm.xlu0 %913, %v256_v27   ;;  %v248_v27 = vld [vmem:[%s1219_s3 + $0x78] sm:$0xff] }
  0x27   :  { %297 = vperm.xlu1 %914, %v255_v28   ;;  %v555_v28 = vld [vmem:[%s1221_s5] sm:$0xff] }
  0x28   :  { %905 = vmatprep.mubr.f32.mxu0 %v555_v28 }
  0x2a   :  { %292 = vperm.xlu0 %913, %v254_v29  }
  0x2b   :  { %287 = vperm.xlu1 %914, %v253_v30  }
  0x2e   :  { %282 = vperm.xlu0 %913, %v252_v31  }
  0x2f   :  { %277 = vperm.xlu1 %914, %v251_v32  }
  0x32   :  { %272 = vperm.xlu0 %913, %v250_v33  }
  0x33   :  { %267 = vperm.xlu1 %914, %v249_v34  }
  0x36   :  { %565 = vperm.xlu0 %913, %v559_v35  }
  0x37   :  { %570 = vperm.xlu1 %914, %v560_v36  }
  0x3a   :  { %575 = vperm.xlu0 %913, %v561_v37  }
  0x3b   :  { %580 = vperm.xlu1 %914, %v562_v38  }
  0x3e   :  { %678 = vperm.xlu0 %913, %v672_v39  }
  0x3f   :  { %683 = vperm.xlu1 %914, %v673_v40  }
  0x42   :  { %688 = vperm.xlu0 %913, %v674_v41  }
  0x43   :  { %693 = vperm.xlu1 %914, %v675_v42  }
  0x46   :  { %717 = vperm.xlu0 %913, %v714_v43  }
  0x81   :  { %v90_v47 = vpop.permute.xlu0 %89 }
  0x82   :  { %v80_v49 = vpop.permute.xlu1 %79 }
  0x85   :  { %v85_v52 = vpop.permute.xlu0 %84 }
  0x86   :  { %v75_v54 = vpop.permute.xlu1 %74 }
  0x89   :  { %v70_v61 = vpop.permute.xlu0 %69 }
  0x8a   :  { %v65_v0 = vpop.permute.xlu1 %64 }
  0x8d   :  { %v60_v5 = vpop.permute.xlu0 %59 }
  0x8e   :  { %v55_v8 = vpop.permute.xlu1 %54 }
  0x91   :  { %v343_v35 = vpop.permute.xlu0 %342 }
  0x92   :  { %v338_v37 = vpop.permute.xlu1 %337 }
  0x95   :  { %v333_v40 = vpop.permute.xlu0 %332 }
  0x96   :  { %v328_v42 = vpop.permute.xlu1 %327 }
  0xc8   :  { %v823_v45 = vpop.f32.mrf.mxu0 }
  0xc9   :  { %v192_v6 = vadd.f32 %v823_v45, %v60_v5  ;;  %v323_v45 = vpop.permute.xlu0 %322 }
  0xca   :  { %v186_v46 = vpop.f32.mrf.mxu0 }
  0xcb   :  { %v187_v9 = vadd.f32 %v186_v46, %v55_v8  ;;  %v226_v11 = vmax.f32 %v192_v6, 0.0 }
  0xcc   :  { %v826_v48 = vpop.f32.mrf.mxu0 }
  0xcd   :  { %v202_v1 = vadd.f32 %v826_v48, %v70_v61  ;;  %v225_v12 = vmax.f32 %v187_v9, 0.0 }
  0xce   :  { %v196_v50 = vpop.f32.mrf.mxu0 }
  0xcf   :  { %v197_v3 = vadd.f32 %v196_v50, %v65_v0  ;;  %v228_v7 = vmax.f32 %v202_v1, 0.0 }
  0xd0   :  { %v829_v51 = vpop.f32.mrf.mxu0 }
  0xd1   :  { %v212_v58 = vadd.f32 %v829_v51, %v80_v49  ;;  %v227_v10 = vmax.f32 %v197_v3, 0.0  ;;  %v313_v51 = vpop.permute.xlu0 %312 }
  0xd2   :  { %v206_v53 = vpop.f32.mrf.mxu0 }
  0xd3   :  { %v207_v62 = vadd.f32 %v206_v53, %v75_v54  ;;  %v230_v2 = vmax.f32 %v212_v58, 0.0 }
  0xd4   :  { %v832_v55 = vpop.f32.mrf.mxu0 }
  0xd5   :  { %v222_v56 = vadd.f32 %v832_v55, %v90_v47  ;;  %v229_v4 = vmax.f32 %v207_v62, 0.0  ;;  %v318_v47 = vpop.permute.xlu1 %317  ;;  %v303_v61 = vpop.permute.xlu0 %302 }
  0xd6   :  { %v216_v57 = vpop.f32.mrf.mxu0 }
  0xd7   :  { %v232_v59 = vmax.f32 %v222_v56, 0.0  ;;  %v217_v60 = vadd.f32 %v216_v57, %v85_v52 }
  0xd9   :  { %v231_v63 = vmax.f32 %v217_v60, 0.0  ;;  %833 = vmatprep.subr.mxu1 %v232_v59  ;;  %v308_v56 = vpop.permute.xlu1 %307  ;;  %v293_v5 = vpop.permute.xlu0 %292 }
  0xda   :  { %834 = vmatpush3.msra.mxu1 %v232_v59 }
  0xdb   :  { %835 = vmatprep.subr.mxu1 %v231_v63 }
  0xdc   :  { %836 = vmatpush3.msra.mxu1 %v231_v63 }
  0xdd   :  { %837 = vmatprep.subr.mxu1 %v230_v2  ;;  %v298_v0 = vpop.permute.xlu1 %297 }
  0xde   :  { %838 = vmatpush3.msra.mxu1 %v230_v2 }
  0xdf   :  { %839 = vmatprep.subr.mxu1 %v229_v4 }
  0xe0   :  { %840 = vmatpush3.msra.mxu1 %v229_v4 }
  0xe1   :  { %841 = vmatprep.subr.mxu1 %v228_v7  ;;  %v288_v8 = vpop.permute.xlu1 %287 }
  0xe2   :  { %842 = vmatpush3.msra.mxu1 %v228_v7 }
  0xe3   :  { %843 = vmatprep.subr.mxu1 %v227_v10 }
  0xe4   :  { %844 = vmatpush3.msra.mxu1 %v227_v10 }
  0xe5   :  { %845 = vmatprep.subr.mxu1 %v226_v11 }
  0xe6   :  { %846 = vmatpush3.msra.mxu1 %v226_v11 }
  0xe7   :  { %847 = vmatprep.subr.mxu1 %v225_v12 }
  0xe8   :  { %848 = vmatpush3.msra.mxu1 %v225_v12 }
  0xe9   :  { %850 = vmatmul.mubr.msk.f32.vlgmr.msra.gmra.mxu1 %vm345_vm1, %v234_v13  ;;  %v283_v13 = vpop.permute.xlu0 %282 }
  0xea   :  { %852 = vmatprep.mubr.msk.f32.mxu1 %vm345_vm1, %v235_v14 }
  0xed   :  { %853 = vmatmul.mubr.msk.f32.gmra.mxu1 %vm345_vm1, %v236_v15 }
  0xee   :  { %855 = vmatprep.mubr.msk.f32.mxu1 %vm345_vm1, %v237_v16  ;;  %v278_v16 = vpop.permute.xlu1 %277 }
  0xf1   :  { %856 = vmatmul.mubr.msk.f32.gmra.mxu1 %vm345_vm1, %v238_v17 }
  0xf2   :  { %858 = vmatprep.mubr.msk.f32.mxu1 %vm345_vm1, %v239_v18 }
  0xf5   :  { %859 = vmatmul.mubr.msk.f32.gmra.mxu1 %vm345_vm1, %v240_v19 }
  0xf6   :  { %861 = vmatprep.mubr.msk.f32.mxu1 %vm345_vm1, %v241_v20 }
  0xf9   :  { %862 = vmatmul.mubr.msk.f32.gmra.mxu1 %vm345_vm1, %v242_v21  ;;  %v273_v21 = vpop.permute.xlu0 %272 }
  0xfa   :  { %864 = vmatprep.mubr.msk.f32.mxu1 %vm345_vm1, %v243_v22 }
  0xfd   :  { %865 = vmatmul.mubr.msk.f32.gmra.mxu1 %vm345_vm1, %v244_v23 }
  0xfe   :  { %867 = vmatprep.mubr.msk.f32.mxu1 %vm345_vm1, %v245_v24  ;;  %v268_v24 = vpop.permute.xlu1 %267 }
 0x101   :  { %868 = vmatmul.mubr.msk.f32.gmra.mxu1 %vm345_vm1, %v246_v25 }
 0x102   :  { %870 = vmatprep.mubr.msk.f32.mxu1 %vm345_vm1, %v247_v26 }
 0x105   :  { %871 = vmatmul.mubr.msk.f32.gmra.mxu1 %vm345_vm1, %v248_v27 }
 0x1a9   :  { %v1192_v29 = vpop.f32.mrf.mxu1 }
 0x1aa   :  { %v466_v22 = vadd.f32 %v1192_v29, %v273_v21  ;;  %v557_v29 = vld [vmem:[%s1221_s5 + $0x10] sm:$0xff] }
 0x1ab   :  { %v1194_v30 = vpop.f32.mrf.mxu1 }
 0x1ac   :  { %v461_v25 = vadd.f32 %v1194_v30, %v268_v24  ;;  %v540_v27 = vmax.f32 %v466_v22, 0.0  ;;  %v558_v30 = vld [vmem:[%s1221_s5 + $0x18] sm:$0xff] }
 0x1ad   :  { %v1196_v31 = vpop.f32.mrf.mxu1 }
 0x1ae   :  { %v476_v17 = vadd.f32 %v1196_v31, %v283_v13  ;;  %v539_v28 = vmax.f32 %v461_v25, 0.0  ;;  %v556_v31 = vld [vmem:[%s1221_s5 + $0x8] sm:$0xff]  ;;  %s938_s5 = smov [#allocation3]  }
 0x1af   :  { %v1198_v32 = vpop.f32.mrf.mxu1  ;;  %s733_s1 = sshll.u32 %s938_s5, 4  ;;  %s734_s1 = int_to_ptr.vmem [resolvable:$true] %s733_s1 }
 0x1b0   :  { %v471_v19 = vadd.f32 %v1198_v32, %v278_v16  ;;  %v542_v23 = vmax.f32 %v476_v17, 0.0  ;;  %v566_v32 = vpop.permute.xlu0 %565  ;;  %s915_s25 = scalar_lea.vmem %s734_s1, 16  ;;  %s919_s26 = scalar_lea.vmem %s734_s1, 32 }
 0x1b1   :  { %v857_v33 = vpop.f32.mrf.mxu1  ;;  %p916_p0 = scmp.ne.s32.totalorder %s734_s1, %s915_s25  ;;  %p920_p1 = scmp.lt.s32.totalorder %s734_s1, %s734_s1 }
 0x1b2   :  { %v486_v11 = vadd.f32 %v857_v33, %v293_v5  ;;  %v541_v26 = vmax.f32 %v471_v19, 0.0  ;;  %v571_v33 = vpop.permute.xlu1 %570  ;;  %p921_p2 = scmp.lt.s32.totalorder %s919_s26, %s915_s25 }
 0x1b3   :  { %v480_v34 = vpop.f32.mrf.mxu1 }
 0x1b4   :  { %v481_v14 = vadd.f32 %v480_v34, %v288_v8  ;;  %v544_v18 = vmax.f32 %v486_v11, 0.0  ;;  %v576_v34 = vpop.permute.xlu0 %575  ;;  %p922_p3 = por %p921_p2, %p920_p1 }
 0x1b5   :  { %v860_v36 = vpop.f32.mrf.mxu1 }
 0x1b6   :  { %v496_v6 = vadd.f32 %v860_v36, %v303_v61  ;;  %v543_v20 = vmax.f32 %v481_v14, 0.0  ;;  %p923_p4 = pnand %p922_p3, %p916_p0 }
 0x1b7   :  { %v490_v38 = vpop.f32.mrf.mxu1 }
 0x1b8   :  { %v491_v9 = vadd.f32 %v490_v38, %v298_v0  ;;  %v546_v12 = vmax.f32 %v496_v6, 0.0 }
 0x1b9   :  { %v863_v39 = vpop.f32.mrf.mxu1 }
 0x1ba   :  { %v506_v1 = vadd.f32 %v863_v39, %v313_v51  ;;  %v545_v15 = vmax.f32 %v491_v9, 0.0  ;;  %v679_v39 = vpop.permute.xlu0 %678 }
 0x1bb   :  { %v500_v41 = vpop.f32.mrf.mxu1 }
 0x1bc   :  { %v501_v3 = vadd.f32 %v500_v41, %v308_v56  ;;  %v548_v7 = vmax.f32 %v506_v1, 0.0 }
 0x1bd   :  { %v866_v43 = vpop.f32.mrf.mxu1 }
 0x1be   :  { %v516_v59 = vadd.f32 %v866_v43, %v323_v45  ;;  %v547_v10 = vmax.f32 %v501_v3, 0.0 }
 0x1bf   :  { %v510_v44 = vpop.f32.mrf.mxu1 }
 0x1c0   :  { %v511_v62 = vadd.f32 %v510_v44, %v318_v47  ;;  %v550_v2 = vmax.f32 %v516_v59, 0.0 }
 0x1c1   :  { %v869_v46 = vpop.f32.mrf.mxu1 }
 0x1c2   :  { %v526_v53 = vadd.f32 %v869_v46, %v333_v40  ;;  %v549_v4 = vmax.f32 %v511_v62, 0.0  ;;  %v720_v62 = vlaneseq }
 0x1c3   :  { %v520_v48 = vpop.f32.mrf.mxu1 }
 0x1c4   :  { %v521_v57 = vadd.f32 %v520_v48, %v328_v42  ;;  %v552_v60 = vmax.f32 %v526_v53, 0.0  ;;  %v689_v53 = vpop.permute.xlu0 %688  ;;  %v721_v1 = vshrl.u32 %v720_v62, 7 }
 0x1c5   :  { %v872_v49 = vpop.f32.mrf.mxu1 }
 0x1c6   :  { %v536_v50 = vadd.f32 %v872_v49, %v343_v35  ;;  %v551_v63 = vmax.f32 %v521_v57, 0.0  ;;  %v581_v35 = vpop.permute.xlu1 %580 }
 0x1c7   :  { %v530_v52 = vpop.f32.mrf.mxu1 }
 0x1c8   :  { %v554_v54 = vmax.f32 %v536_v50, 0.0  ;;  %v531_v55 = vadd.f32 %v530_v52, %v338_v37  ;;  %v718_v6 = vpop.permute.xlu0 %717 }
 0x1ca   :  { %v553_v58 = vmax.f32 %v531_v55, 0.0  ;;  %873 = vmatprep.subr.mxu0 %v554_v54  ;;  %v684_v42 = vpop.permute.xlu1 %683 }
 0x1cb   :  { %874 = vmatpush3.msra.mxu0 %v554_v54 }
 0x1cc   :  { %875 = vmatprep.subr.mxu0 %v553_v58 }
 0x1cd   :  { %876 = vmatpush3.msra.mxu0 %v553_v58 }
 0x1ce   :  { %877 = vmatprep.subr.mxu0 %v552_v60  ;;  %v694_v54 = vpop.permute.xlu1 %693 }
 0x1cf   :  { %878 = vmatpush3.msra.mxu0 %v552_v60 }
 0x1d0   :  { %879 = vmatprep.subr.mxu0 %v551_v63 }
 0x1d1   :  { %880 = vmatpush3.msra.mxu0 %v551_v63 }
 0x1d2   :  { %881 = vmatprep.subr.mxu0 %v550_v2 }
 0x1d3   :  { %882 = vmatpush3.msra.mxu0 %v550_v2 }
 0x1d4   :  { %883 = vmatprep.subr.mxu0 %v549_v4 }
 0x1d5   :  { %884 = vmatpush3.msra.mxu0 %v549_v4  ;;  %v722_v4 = vsub.s32 0, %v721_v1 }
 0x1d6   :  { %885 = vmatprep.subr.mxu0 %v548_v7 }
 0x1d7   :  { %886 = vmatpush3.msra.mxu0 %v548_v7  ;;  %v723_v8 = vrot.slane %v718_v6, %v722_v4 }
 0x1d8   :  { %887 = vmatprep.subr.mxu0 %v547_v10 }
 0x1d9   :  { %888 = vmatpush3.msra.mxu0 %v547_v10 }
 0x1da   :  { %889 = vmatprep.subr.mxu0 %v546_v12 }
 0x1db   :  { %890 = vmatpush3.msra.mxu0 %v546_v12 }
 0x1dc   :  { %891 = vmatprep.subr.mxu0 %v545_v15 }
 0x1dd   :  { %892 = vmatpush3.msra.mxu0 %v545_v15 }
 0x1de   :  { %893 = vmatprep.subr.mxu0 %v544_v18 }
 0x1df   :  { %894 = vmatpush3.msra.mxu0 %v544_v18 }
 0x1e0   :  { %895 = vmatprep.subr.mxu0 %v543_v20 }
 0x1e1   :  { %896 = vmatpush3.msra.mxu0 %v543_v20 }
 0x1e2   :  { %897 = vmatprep.subr.mxu0 %v542_v23 }
 0x1e3   :  { %898 = vmatpush3.msra.mxu0 %v542_v23 }
 0x1e4   :  { %899 = vmatprep.subr.mxu0 %v541_v26 }
 0x1e5   :  { %900 = vmatpush3.msra.mxu0 %v541_v26 }
 0x1e6   :  { %901 = vmatprep.subr.mxu0 %v540_v27 }
 0x1e7   :  { %902 = vmatpush3.msra.mxu0 %v540_v27 }
 0x1e8   :  { %903 = vmatprep.subr.mxu0 %v539_v28 }
 0x1e9   :  { %904 = vmatpush3.msra.mxu0 %v539_v28 }
 0x1ea   :  { %906 = vmatmul.mubr.f32.vlgmr.msra.gmra.mxu0 %v556_v31 }
 0x1eb   :  { %908 = vmatprep.mubr.f32.mxu0 %v557_v29 }
 0x1ee   :  { %909 = vmatmul.mubr.f32.gmra.mxu0 %v558_v30 }
 0x2aa   :  { %v907_v36 = vpop.f32.mrf.mxu0 }
 0x2ab   :  { %v655_v37 = vadd.f32 %v907_v36, %v571_v33 }
 0x2ac   :  { %v649_v38 = vpop.f32.mrf.mxu0 }
 0x2ad   :  { %v669_v40 = vmax.f32 %v655_v37, 0.0  ;;  %v650_v41 = vadd.f32 %v649_v38, %v566_v32 }
 0x2ae   :  { %v910_v43 = vpop.f32.mrf.mxu0 }
 0x2af   :  { %v668_v44 = vmax.f32 %v650_v41, 0.0  ;;  %v665_v45 = vadd.f32 %v910_v43, %v581_v35  ;;  %v697_v47 = vmul.f32 %v684_v42, %v669_v40 }
 0x2b0   :  { %v659_v46 = vpop.f32.mrf.mxu0 }
 0x2b1   :  { %v696_v48 = vmul.f32 %v679_v39, %v668_v44  ;;  %v671_v49 = vmax.f32 %v665_v45, 0.0  ;;  %v660_v50 = vadd.f32 %v659_v46, %v576_v34  ;;  %v702_v55 = vsel %vm700_vm2, %v697_v47, 0.0 }
 0x2b3   :  { %v701_v51 = vsel %vm700_vm2, %v696_v48, 0.0  ;;  %v670_v52 = vmax.f32 %v660_v50, 0.0  ;;  %v699_v56 = vmul.f32 %v694_v54, %v671_v49 }
 0x2b4   :  { %v703_v58 = vadd.f32 %v702_v55, %v701_v51 }
 0x2b5   :  { %v698_v57 = vmul.f32 %v689_v53, %v670_v52  ;;  %v706_v61 = vsel %vm700_vm2, %v699_v56, 0.0 }
 0x2b7   :  { %v704_v59 = vsel %vm700_vm2, %v698_v57, 0.0 }
 0x2b8   :  { %v705_v60 = vadd.f32 %v704_v59, %v703_v58 }
 0x2ba   :  { %v707_v63 = vadd.f32 %v706_v61, %v705_v60 }
 0x2bc   :  { %v708_v0 = vrot.slane %v707_v63, 4 }
 0x2be   :  { %v709_v2 = vadd.f32 %v708_v0, %v707_v63 }
 0x2c0   :  { %v710_v3 = vrot.slane %v709_v2, 2 }
 0x2c2   :  { %v711_v5 = vadd.f32 %v710_v3, %v709_v2 }
 0x2c4   :  { %v712_v7 = vrot.slane %v711_v5, 1 }
 0x2c6   :  { %v713_v9 = vadd.f32 %v712_v7, %v711_v5 }
 0x2c8   :  { %v724_v10 = vadd.f32 %v723_v8, %v713_v9 }
 0x2ca   :  { %726 = vst.msk [vmem:[#allocation3] sm:$0x1] %vm725_vm3, %v724_v10 }
 0x2cb   :  { %926 = shalt.err (!%p923_p4)
}
 0x2cc   :  { %736 = dma.vmem_to_hbm [thread:$0]  %s734_s1, 16, %s1225_s9, [#allocation4]  }
 0x2cd   :  { %935 = dma.done.wait [#allocation4], 16  }
 0x2ce   :  { %936 = vsyncadd [#allocation4], 4294967280 }
 0x2cf   :  { %740 = vsyncpa [#allocation4], 1 }

</bundles_post_ra>
